<compile_context>
chip_gen: v6e
topology: v6e:2x2x1
jax: 0.10.0
libtpu: 0.0.40
codegen_flags: <defaults>
</compile_context>

<pallas_src>
import functools

import numpy as np
import jax
import jax.numpy as jnp
from jax.experimental import pallas as pl
from jax.experimental.pallas import tpu as pltpu

_HALO = 128   # lane halo (in chunks) appended after each main tile; covers shifts <= 127


# ----------------------------------------------------------------------------
# Operator-matrix construction (wrapper glue, plain JAX, differentiable)
# ----------------------------------------------------------------------------

def split_matrices(C):
    """even = x @ E, odd = x @ O (mirrors data[:, :, ::2] / data[:, :, 1::2])."""
    j = jnp.arange(C // 2)
    E = jnp.zeros((C, C // 2), jnp.float32).at[2 * j, j].set(1.0)
    O = jnp.zeros((C, C // 2), jnp.float32).at[2 * j + 1, j].set(1.0)
    return E, O


def predict_matrix(w, C):
    """order-2 predict: reflect pad (0,1) then conv1d([w0,w1])."""
    P = jnp.zeros((C, C), jnp.float32)
    j = jnp.arange(C)
    P = P.at[j, j].add(w[0])
    jj = jnp.arange(C - 1)
    P = P.at[jj + 1, jj].add(w[1])
    P = P.at[C - 2, C - 1].add(w[1])
    return P


def update_matrix(u, C):
    """order-2 update: reflect pad (1,0) then conv1d([u0,u1])."""
    U = jnp.zeros((C, C), jnp.float32)
    j = jnp.arange(1, C)
    U = U.at[j, j].add(u[1])
    U = U.at[j - 1, j].add(u[0])
    U = U.at[0, 0].add(u[1])
    U = U.at[1, 0].add(u[0])
    return U


def delta_matrix(C, win_length=5):
    """torchaudio ComputeDeltas (win_length=5, mode='replicate') as a C x C matrix."""
    n = (win_length - 1) // 2
    denom = n * (n + 1) * (2 * n + 1) / 3.0
    D = np.zeros((C, C), np.float32)
    for t in range(C):
        for k in range(-n, n + 1):
            src = min(max(t + k, 0), C - 1)
            D[src, t] += k / denom
    return jnp.asarray(D)


def compose_transform_matrix(predict_w, update_w, window_size, n_steps, win_length=5):
    """Fold all lifting steps + both delta passes into one (window_size, 3*C_final)
    matrix:  out_frame = frame @ W.  Differentiable w.r.t. predict_w / update_w."""
    C = window_size
    M = jnp.eye(window_size, dtype=jnp.float32)   # cumulative lowpass transform
    M_det = None
    for _ in range(n_steps):
        E, O = split_matrices(C)
        P = predict_matrix(predict_w, C // 2)
        U = update_matrix(update_w, C // 2)
        Det = O - E @ P                 # details of this step:  x @ Det
        M_det = M @ Det                 # (window_size, C//2) -- kept from LAST step
        M = M @ (E + Det @ U)           # next-step lowpass
        C //= 2
    D = delta_matrix(C, win_length)
    MD = M @ D                          # first-order deltas
    W = jnp.concatenate([M_det, MD, MD @ D], axis=1)   # (window_size, 3*C)
    return W, C


# ----------------------------------------------------------------------------
# Pallas kernels
# ----------------------------------------------------------------------------

def _chunked_gemm_kernel(wt_ref, x_ref, xh_ref, o_ref, *, k, tl):
    """out[:, l] = sum_s Wt_s @ chunks[:, l+s]   (frames on the lane axis).

    wt_ref: (k, n_out, stride)   x_ref: (1, stride, tl)   xh_ref: (1, stride, _HALO)
    o_ref : (1, n_out, tl)
    """
    comb = jnp.concatenate([x_ref[0], xh_ref[0]], axis=1)        # (stride, tl + _HALO)
    acc = jnp.dot(wt_ref[0], comb[:, :tl], preferred_element_type=jnp.float32)
    for s in range(1, k):
        acc = acc + jnp.dot(wt_ref[s], comb[:, s:s + tl],
                            preferred_element_type=jnp.float32)
    o_ref[0] = acc.astype(o_ref.dtype)


def _flat_gemm_kernel(wt_ref, x_ref, o_ref):
    """Small-L path: one dense GEMM over batch-flattened frames.

    wt_ref: (n_out, window)   x_ref: (window, tl)   o_ref: (n_out, tl)
    """
    o_ref[...] = jnp.dot(wt_ref[...], x_ref[...],
                         preferred_element_type=jnp.float32).astype(o_ref.dtype)


def _pick_lane_tile(n, max_tile):
    """Largest useful 128-aligned lane tile, never exceeding max_tile, aiming
    for >= 2 grid steps whenever n allows it (keeps both v7x TensorCores busy)."""
    max_tile = max(128, (int(max_tile) // 128) * 128)
    if n <= 128:
        return n                        # single full-extent lane block
    tl = 128 * max(1, -(-n // 256))     # ~ceil(n/2), rounded up to a vreg width
    return min(tl, max_tile)


# ----------------------------------------------------------------------------
# Wrapper
# ----------------------------------------------------------------------------

def interpolating_wavelet_forward(x, predict_w, update_w, *,
                                  window_size=32, window_stride=16, output_dim=8,
                                  max_lane_tile=8192, out_dtype=jnp.float32):
    """x: (B, T) float32 waveform.  Returns (B, 3*C_final, L), PyTorch layout."""
    x = x.astype(jnp.float32)
    B, T = x.shape
    n_steps = int(np.round(np.log2(window_size / output_dim)))
    assert n_steps >= 1 and window_size % (2 ** n_steps) == 0
    # TODO(synk): the odd-window-length branch of split() (last-sample duplication)
    # and the avg_diff / avg_details running-state side effects are not reproduced.

    W, c_final = compose_transform_matrix(predict_w, update_w, window_size, n_steps)
    n_out = 3 * c_final
    L = (T - window_size) // window_stride + 1
    assert L >= 1
    flops = 2 * window_size * n_out * B * L

    k = window_size // window_stride
    chunked_ok = (window_size % window_stride == 0) and (1 <= k <= _HALO)

    if L >= 128 and chunked_ok:
        # --------- main path: in-kernel framing from stride-sized chunk columns ----------
        stride = window_stride
        n_chunks = T // stride           # trailing (< stride) samples are unused by any frame
        tl = _pick_lane_tile(L, max_lane_tile)       # multiple of 128 here
        grid_l = pl.cdiv(L, tl)
        c_pad = grid_l * tl + _HALO

        # Free reshape to chunks, tiny zero-pad, then ONE transpose pass (chunks -> lanes).
        x2 = x[:, :n_chunks * stride].reshape(B, n_chunks, stride)
        x2 = jnp.pad(x2, ((0, 0), (0, c_pad - n_chunks), (0, 0)))
        xT = jnp.transpose(x2, (0, 2, 1))            # (B, stride, c_pad)
        # TODO(synk): this transpose is the last host-side HBM pass (~2 B / input B);
        # folding it into the kernel would need a per-tile VMEM chunk transpose.

        wt = jnp.stack([W[s * stride:(s + 1) * stride, :].T
                        for s in range(k)])          # (k, n_out, stride)

        bytes_accessed = int(B * stride * c_pad * 4
                             + B * n_out * L * jnp.dtype(out_dtype).itemsize
                             + wt.size * 4)

        out = pl.pallas_call(
            functools.partial(_chunked_gemm_kernel, k=k, tl=tl),
            out_shape=jax.ShapeDtypeStruct((B, n_out, L), out_dtype),
            grid=(B, grid_l),
            in_specs=[
                # Tiny constant operand (a few KiB). pl.Buffered(1) would shave the
                # redundant second buffer but is not worth the risk for ~3 KiB.
                pl.BlockSpec((k, n_out, stride), lambda b, j: (0, 0, 0)),
                # Main chunk tile: chunks [j*tl, (j+1)*tl).
                pl.BlockSpec((1, stride, tl), lambda b, j: (b, 0, j)),
                # 128-chunk halo right after the main tile (same array, second spec).
                pl.BlockSpec((1, stride, _HALO),
                             lambda b, j: (b, 0, (j + 1) * tl // _HALO)),
            ],
            # Ragged L: last block is partial -> masked writeback, no host-side slice.
            out_specs=pl.BlockSpec((1, n_out, tl), lambda b, j: (b, 0, j)),
            compiler_params=pltpu.CompilerParams(
                dimension_semantics=("parallel", "parallel")),
            cost_estimate=pl.CostEstimate(flops=flops, transcendentals=0,
                                          bytes_accessed=bytes_accessed),
        )(wt, xT, xT)
        return out

    # --------- small-L / fallback path: flatten frames across the batch ----------
    # (L < 128 would otherwise give tiny masked-lane stores and one grid step per
    #  batch row; the data volume is tiny here so the gather framing is fine.)
    N = B * L
    tl = _pick_lane_tile(N, max_lane_tile)
    frame_idx = (np.arange(L)[:, None] * window_stride +
                 np.arange(window_size)[None, :])
    frames = jnp.transpose(x[:, frame_idx].reshape(B * L, window_size))   # (window, B*L)
    wt = W.T                                                              # (n_out, window)

    bytes_accessed = int(N * window_size * 4
                         + N * n_out * jnp.dtype(out_dtype).itemsize
                         + wt.size * 4)

    out_flat = pl.pallas_call(
        _flat_gemm_kernel,
        out_shape=jax.ShapeDtypeStruct((n_out, N), out_dtype),
        grid=(pl.cdiv(N, tl),),
        in_specs=[
            pl.BlockSpec((n_out, window_size), lambda i: (0, 0)),
            pl.BlockSpec((window_size, tl), lambda i: (0, i)),
        ],
        out_specs=pl.BlockSpec((n_out, tl), lambda i: (0, i)),
        compiler_params=pltpu.CompilerParams(dimension_semantics=("parallel",)),
        cost_estimate=pl.CostEstimate(flops=flops, transcendentals=0,
                                      bytes_accessed=bytes_accessed),
    )(wt, frames)
    # Tiny wrapper transpose of the 24-channel output back to (B, n_out, L).
    return jnp.transpose(out_flat.reshape(n_out, B, L), (1, 0, 2))


# ----------------------------------------------------------------------------
# Pure-JAX reference (mirrors the PyTorch forward exactly) for validation
# ----------------------------------------------------------------------------

def _predict_ref(even, w):
    padded = jnp.concatenate([even, even[..., -2:-1]], axis=-1)   # reflect pad (0,1)
    return w[0] * padded[..., :-1] + w[1] * padded[..., 1:]


def _update_ref(d, u):
    padded = jnp.concatenate([d[..., 1:2], d], axis=-1)           # reflect pad (1,0)
    return u[0] * padded[..., :-1] + u[1] * padded[..., 1:]


def _deltas_ref(x, win_length=5):
    n = (win_length - 1) // 2
    denom = n * (n + 1) * (2 * n + 1) / 3.0
    left = jnp.repeat(x[..., :1], n, axis=-1)
    right = jnp.repeat(x[..., -1:], n, axis=-1)
    padded = jnp.concatenate([left, x, right], axis=-1)
    C = x.shape[-1]
    acc = jnp.zeros_like(x)
    for j, kk in enumerate(range(-n, n + 1)):
        acc = acc + kk * padded[..., j:j + C]
    return acc / denom


def reference_forward(x, pw, uw, window_size=32, window_stride=16, output_dim=8):
    n_steps = int(np.round(np.log2(window_size / output_dim)))
    B, T = x.shape
    L = (T - window_size) // window_stride + 1
    frame_idx = (np.arange(L)[:, None] * window_stride +
                 np.arange(window_size)[None, :])
    xu = x[:, frame_idx]
    details = None
    for _ in range(n_steps):
        even = xu[:, :, ::2]
        odd = xu[:, :, 1::2]
        details = odd - _predict_ref(even, pw)
        xu = even + _update_ref(details, uw)
    fo = _deltas_ref(xu)
    so = _deltas_ref(fo)
    out = jnp.concatenate([details, fo, so], axis=2)
    return jnp.transpose(out, (0, 2, 1))


# ----------------------------------------------------------------------------

if __name__ == "__main__":
    key = jax.random.PRNGKey(0)
    k1, k2 = jax.random.split(key)

    # deterministic parameter init, exactly as the module's order=2 learnable init
    predict_w = jnp.array([0.5, 0.5], dtype=jnp.float32)
    update_w = jnp.array([0.25, 0.25], dtype=jnp.float32)

    fwd = jax.jit(functools.partial(interpolating_wavelet_forward,
                                    window_size=32, window_stride=16, output_dim=8))

    # Case 1: tiny L (demo shape) -> batch-flattened GEMM path.
    x_small = jax.random.normal(k1, (2, 272), dtype=jnp.float32)   # L = 16
    out_small = jax.block_until_ready(fwd(x_small, predict_w, update_w))
    ref_small = reference_forward(x_small, predict_w, update_w,
                                  window_size=32, window_stride=16, output_dim=8)
    assert out_small.shape == (2, 24, 16), out_small.shape
    np.testing.assert_allclose(np.asarray(out_small), np.asarray(ref_small),
                               rtol=1e-5, atol=1e-5)

    # Case 2: larger L with a ragged tail and T not a multiple of the stride
    # -> chunked in-kernel-framing path (halo BlockSpec + masked partial store).
    x_big = jax.random.normal(k2, (2, 3221), dtype=jnp.float32)    # L = 200
    out_big = jax.block_until_ready(fwd(x_big, predict_w, update_w))
    ref_big = reference_forward(x_big, predict_w, update_w,
                                window_size=32, window_stride=16, output_dim=8)
    assert out_big.shape == (2, 24, 200), out_big.shape
    np.testing.assert_allclose(np.asarray(out_big), np.asarray(ref_big),
                               rtol=1e-5, atol=1e-5)

    print("KERNEL_OK")
</pallas_src>

<mosaic_0001>
module attributes {stable_mosaic.version = 11 : i64} {
  func.func private @main(%arg0: i32) attributes {dimension_semantics = [#tpu.dimension_semantics<core_parallel>], iteration_bounds = array<i64: 2>, tpu.core_type = #tpu.core_type<sc_scalar_subcore>, window_params = []} {
    return
  }
}

module attributes {stable_mosaic.version = 11 : i64} {
  func.func private @main(%arg0: i32) attributes {dimension_semantics = [#tpu.dimension_semantics<core_parallel>], iteration_bounds = array<i64: 2>, tpu.core_type = #tpu.core_type<sc_scalar_subcore>, window_params = []} {
    return
  }
}

module attributes {stable_mosaic.version = 11 : i64} {
  func.func @_flat_gemm_kernel(%arg0: i32, %arg1: memref<24x32xf32, #tpu.memory_space<vmem>>, %arg2: memref<32x32xf32, #tpu.memory_space<vmem>>, %arg3: memref<24x32xf32, #tpu.memory_space<vmem>>) attributes {dimension_semantics = [#tpu.dimension_semantics<parallel>], iteration_bounds = array<i64: 1>, scalar_prefetch = 0 : i64, scratch_operands = 0 : i64, tpu.core_type = #tpu.core_type<tc>, window_params = [{pipeline_mode = #tpu.pipeline_mode<synchronous>, transform_indices = @transform_0, window_bounds = array<i64: 24, 32>}, {transform_indices = @transform_1, window_bounds = array<i64: 32, 32>}, {transform_indices = @transform_2, window_bounds = array<i64: 24, 32>}]} {
    %c0 = arith.constant 0 : index
    %c0_0 = arith.constant 0 : index
    %0 = vector.load %arg1[%c0, %c0_0] : memref<24x32xf32, #tpu.memory_space<vmem>>, vector<24x32xf32>
    %c0_1 = arith.constant 0 : index
    %c0_2 = arith.constant 0 : index
    %1 = vector.load %arg2[%c0_1, %c0_2] : memref<32x32xf32, #tpu.memory_space<vmem>>, vector<32x32xf32>
    %cst = arith.constant dense<0.000000e+00> : vector<24x32xf32>
    %2 = tpu.matmul %0, %1, %cst {dimension_numbers = #tpu.dot_dimension_numbers<[1], [0], [0], [1], [0, 0, 1, 1], [], []>} : vector<24x32xf32>, vector<32x32xf32>, vector<24x32xf32> -> vector<24x32xf32>
    %c0_3 = arith.constant 0 : index
    %c0_4 = arith.constant 0 : index
    %3 = vector.load %arg3[%c0_3, %c0_4] : memref<24x32xf32, #tpu.memory_space<vmem>>, vector<24x32xf32>
    tpu.vector_store %arg3[%c0_3, %c0_4], %2 {strides = array<i32>} : memref<24x32xf32, #tpu.memory_space<vmem>>, vector<24x32xf32>,
    return
  }
  func.func @transform_0(%arg0: i32) -> (i32, i32) {
    %c0_i32 = arith.constant 0 : i32
    %c0_i32_0 = arith.constant 0 : i32
    %c0_i32_1 = arith.constant 0 : i32
    return %c0_i32, %c0_i32_0 : i32, i32
  }
  func.func @transform_1(%arg0: i32) -> (i32, i32) {
    %c0_i32 = arith.constant 0 : i32
    %c0_i32_0 = arith.constant 0 : i32
    return %c0_i32, %arg0 : i32, i32
  }
  func.func @transform_2(%arg0: i32) -> (i32, i32) {
    %c0_i32 = arith.constant 0 : i32
    %c0_i32_0 = arith.constant 0 : i32
    return %c0_i32, %arg0 : i32, i32
  }
}

</mosaic_0001>

<bundles_post_ra>
// kernel: interpolating_wavelet_forward.1
= control target key start
LH: loop header
LB: loop body
LE: loop exit
PB: predicated region body
PF: predicated region fallthrough
CT: control target
= control target key end

     0   :  { %v152_v0 = vmov 0.0   ;;  %vm18_vm0 = vcmask 261120   ;;  %vm153_vm1 = vmmov 0   ;;  %s205_s1 = inlined_call_operand.vmem [shape: f32[32,32], index: 1, kind: input, shape index: {}]   ;;  %s206_s0 = inlined_call_operand.vmem [shape: f32[24,32], index: 0, kind: input, shape index: {}]   ;;  %s207_s2 = inlined_call_operand.vmem [shape: f32[24,32], index: 2, kind: output, shape index: {}]  }
   0x1   :  { %142 = vmatprep.subr.mxu1 %v152_v0  ;;  %v17_v1 = vld [vmem:[%s205_s1 + $0x18] sm:$0xff]  ;;  %125 = vmatprep.subr.mxu0 %v152_v0  ;;  %v16_v2 = vld [vmem:[%s205_s1 + $0x10] sm:$0xff]  ;;  %v15_v3 = vld [vmem:[%s205_s1 + $0x8] sm:$0xff] }
   0x2   :  { %146 = vmatpush3.msra.mxu1 %v17_v1  ;;  %126 = vmatpush3.msra.mxu0 %v17_v1  ;;  %v14_v4 = vld [vmem:[%s205_s1] sm:$0xff]  ;;  %v12_v5 = vld [vmem:[%s206_s0 + $0x8] sm:$0xff]  ;;  %v13_v7 = vld [vmem:[%s206_s0 + $0x10] sm:$0xff] }
   0x3   :  { %143 = vmatprep.subr.mxu1 %v152_v0  ;;  %127 = vmatprep.subr.mxu0 %v152_v0  ;;  %v11_v6 = vld [vmem:[%s206_s0] sm:$0xff] }
   0x4   :  { %147 = vmatpush3.msra.mxu1 %v16_v2  ;;  %128 = vmatpush3.msra.mxu0 %v16_v2 }
   0x5   :  { %144 = vmatprep.subr.mxu1 %v152_v0  ;;  %129 = vmatprep.subr.mxu0 %v152_v0 }
   0x6   :  { %148 = vmatpush3.msra.mxu1 %v15_v3  ;;  %130 = vmatpush3.msra.mxu0 %v15_v3 }
   0x7   :  { %145 = vmatprep.subr.mxu1 %v152_v0  ;;  %136 = vmatprep.mubr.msk.f32.mxu1 %vm153_vm1, %v152_v0 }
   0x8   :  { %149 = vmatpush3.msra.mxu1 %v14_v4  ;;  %131 = vmatprep.subr.mxu0 %v152_v0 }
   0x9   :  { %137 = vmatmul.mubr.msk.f32.vlgmr.msra.gmra.mxu1 %vm18_vm0, %v12_v5  ;;  %132 = vmatpush3.msra.mxu0 %v14_v4 }
   0xa   :  { %133 = vmatprep.mubr.msk.f32.mxu0 %vm153_vm1, %v152_v0  ;;  %139 = vmatprep.mubr.msk.f32.mxu1 %vm153_vm1, %v152_v0 }
   0xb   :  { %134 = vmatmul.mubr.msk.f32.vlgmr.msra.gmra.mxu0 %vm18_vm0, %v11_v6 }
   0xd   :  { %140 = vmatmul.mubr.msk.f32.gmra.mxu1 %vm18_vm0, %v13_v7 }
  0xc9   :  { %v99_v8 = vpop.f32.mrf.mxu1 }
  0xca   :  { %109 = vst.msk [vmem:[%s207_s2 + $0x8] sm:$0xff] %vm18_vm0, %v99_v8 }
  0xcb   :  { %v94_v9 = vpop.f32.mrf.mxu0  ;;  %v138_v10 = vpop.f32.mrf.mxu1 }
  0xcc   :  { %108 = vst.msk [vmem:[%s207_s2] sm:$0xff] %vm18_vm0, %v94_v9 }
  0xcd   :  { %v135_v11 = vpop.f32.mrf.mxu0  ;;  %v104_v12 = vpop.f32.mrf.mxu1 }
  0xce   :  { %110 = vst.msk [vmem:[%s207_s2 + $0x10] sm:$0xff] %vm18_vm0, %v104_v12 }
  0xcf   :  { %v141_v13 = vpop.f32.mrf.mxu1 }

</bundles_post_ra>
